<compile_context>
chip_gen: v6e
topology: v6e:2x2x1
jax: 0.10.0
libtpu: 0.0.40
codegen_flags: <defaults>
</compile_context>

<pallas_src>
import functools

import jax
import jax.numpy as jnp
from jax.experimental import pallas as pl
from jax.experimental.pallas import tpu as pltpu

NEG_SLOPE = 0.01      # F.leaky_relu default negative slope
LANE = 128            # TPU lane width; feature-dim padding target


def _round_up(x, m):
    return ((x + m - 1) // m) * m


def _leaky_relu(v):
    # For 0 < slope < 1, leaky_relu(v) == max(v, slope*v): saves a compare+select.
    return jnp.maximum(v, NEG_SLOPE * v)


def vector_spr_decoder_kernel(z_ref, a_ref, w0z_ref, w0a_ref, b0_ref,
                              w1_ref, b1_ref, w2_ref, b2_ref, w3_ref, b3_ref,
                              out_ref, *, latent_dim):
    # ---- transition: code = tanh(renormalize(relu(code_mlp(cat(z, a))))) ----
    # First Linear as two dots against the row-split weight (no concat needed).
    z = z_ref[...].astype(w0z_ref.dtype)                              # (TB, L)  bf16
    a = a_ref[...].astype(w0a_ref.dtype)                              # (TB, A)  bf16
    h = (jnp.dot(z, w0z_ref[...], preferred_element_type=jnp.float32)
         + jnp.dot(a, w0a_ref[...], preferred_element_type=jnp.float32)
         + b0_ref[...])                                               # (TB, HP) f32
    h = _leaky_relu(h)

    c = jnp.dot(h.astype(w1_ref.dtype), w1_ref[...],
                preferred_element_type=jnp.float32) + b1_ref[...]     # (TB, LP) f32
    c = jnp.maximum(c, 0.0)                                           # relu; pad lanes exactly 0

    # renormalize(first_dim=1): per-row min/max over the real latent lanes.
    # Post-ReLU padded lanes are exactly 0, so the max needs no mask; only the min does.
    lane = jax.lax.broadcasted_iota(jnp.int32, c.shape, dimension=1)
    cmax = jnp.max(c, axis=-1, keepdims=True)
    cmin = jnp.min(jnp.where(lane < latent_dim, c, jnp.inf), axis=-1, keepdims=True)
    # Epsilon clamp avoids 0/0 -> NaN when a row is constant (e.g. zero-padded batch
    # rows); real rows with cmax > cmin are numerically unaffected.
    inv = pl.reciprocal(jnp.maximum(cmax - cmin, 1e-12), approx=True)
    code = jnp.tanh((c - cmin) * inv)          # pad lanes harmless: w2 pad rows are zero

    # ---- project: tanh(proj_mlp(code)) ----
    p = jnp.dot(code.astype(w2_ref.dtype), w2_ref[...],
                preferred_element_type=jnp.float32) + b2_ref[...]     # (TB, HP)
    p = _leaky_relu(p)
    y = jnp.dot(p.astype(w3_ref.dtype), w3_ref[...],
                preferred_element_type=jnp.float32) + b3_ref[...]     # (TB, LP)
    out_ref[...] = jnp.tanh(y[:, :latent_dim])                        # un-padded (TB, L) store


def prep_params(raw, latent_dim, action_dim, hidden_dim, *, weight_dtype=jnp.bfloat16):
    """Transpose PyTorch (out,in) weights to (in,out), split the first weight by input
    rows (z vs action), zero-pad feature dims to 128, cast weights to bf16 (biases stay
    f32, added to f32 accumulators)."""
    hp = _round_up(hidden_dim, LANE)
    lp = _round_up(latent_dim, LANE)

    def pad_w(w_t, rows, cols):
        out = jnp.zeros((rows, cols), jnp.float32)
        out = out.at[:w_t.shape[0], :w_t.shape[1]].set(w_t)
        return out.astype(weight_dtype)

    def pad_b(b, cols):
        out = jnp.zeros((1, cols), jnp.float32)
        return out.at[0, :b.shape[0]].set(b)

    w0_t = raw["code0_w"].T                                 # (latent+act, hidden)
    return {
        "w0z": pad_w(w0_t[:latent_dim], latent_dim, hp),
        "w0a": pad_w(w0_t[latent_dim:], action_dim, hp),
        "b0": pad_b(raw["code0_b"], hp),
        "w1": pad_w(raw["code2_w"].T, hp, lp), "b1": pad_b(raw["code2_b"], lp),
        "w2": pad_w(raw["proj0_w"].T, lp, hp), "b2": pad_b(raw["proj0_b"], hp),
        "w3": pad_w(raw["proj2_w"].T, hp, lp), "b3": pad_b(raw["proj2_b"], lp),
        "latent_dim": latent_dim, "action_dim": action_dim, "hidden_dim": hidden_dim,
    }


def init_params(key, latent_dim, action_dim, hidden_dim, *, weight_dtype=jnp.bfloat16):
    """Deterministic synthetic parameters with the PyTorch module's shapes."""
    keys = jax.random.split(key, 8)
    s = 0.1
    raw = {
        "code0_w": s * jax.random.normal(keys[0], (hidden_dim, latent_dim + action_dim), jnp.float32),
        "code0_b": s * jax.random.normal(keys[1], (hidden_dim,), jnp.float32),
        "code2_w": s * jax.random.normal(keys[2], (latent_dim, hidden_dim), jnp.float32),
        "code2_b": s * jax.random.normal(keys[3], (latent_dim,), jnp.float32),
        "proj0_w": s * jax.random.normal(keys[4], (hidden_dim, latent_dim), jnp.float32),
        "proj0_b": s * jax.random.normal(keys[5], (hidden_dim,), jnp.float32),
        "proj2_w": s * jax.random.normal(keys[6], (latent_dim, hidden_dim), jnp.float32),
        "proj2_b": s * jax.random.normal(keys[7], (latent_dim,), jnp.float32),
    }
    return raw, prep_params(raw, latent_dim, action_dim, hidden_dim, weight_dtype=weight_dtype)


def vector_spr_decoder_forward(z, action, params, *, block_rows=256):
    """z: (B, latent) f32, action: (B, act) f32. Returns (B, latent) float32."""
    b = z.shape[0]
    latent_dim = params["latent_dim"]
    action_dim = params["action_dim"]
    hidden_dim = params["hidden_dim"]

    # Batch tile: multiple of 16 (bf16 sublane pack), capped at block_rows for
    # prefetch/writeback overlap, and never more than ceil(b/2) so the grid has >= 2
    # steps whenever possible (both v7x TensorCores get work).
    tb = max(16, min(block_rows, _round_up(pl.cdiv(b, 2), 16)))
    bp = _round_up(b, tb)
    if bp != b:
        z = jnp.pad(z, ((0, bp - b), (0, 0)))
        action = jnp.pad(action, ((0, bp - b), (0, 0)))

    weight_args = (params["w0z"], params["w0a"], params["b0"],
                   params["w1"], params["b1"],
                   params["w2"], params["b2"],
                   params["w3"], params["b3"])
    in_specs = [pl.BlockSpec((tb, latent_dim), lambda i: (i, 0)),
                pl.BlockSpec((tb, action_dim), lambda i: (i, 0))]
    # Weights/biases: full-array blocks with constant index_map -> resident in VMEM.
    in_specs += [pl.BlockSpec(w.shape, lambda i: (0, 0)) for w in weight_args]

    flops = 2 * b * ((latent_dim + action_dim) * hidden_dim
                     + hidden_dim * latent_dim
                     + latent_dim * hidden_dim
                     + hidden_dim * latent_dim)
    transcendentals = b * (LANE + latent_dim + 1)          # code tanh (padded lanes) + out tanh + recip
    bytes_accessed = int(bp * (latent_dim + action_dim) * 4                        # z, action
                         + sum(int(w.size) * w.dtype.itemsize for w in weight_args)
                         + bp * latent_dim * 4)                                    # un-padded out
    cost = pl.CostEstimate(flops=int(flops), transcendentals=int(transcendentals),
                           bytes_accessed=bytes_accessed)

    out = pl.pallas_call(
        functools.partial(vector_spr_decoder_kernel, latent_dim=latent_dim),
        out_shape=jax.ShapeDtypeStruct((bp, latent_dim), jnp.float32),
        grid=(bp // tb,),
        in_specs=in_specs,
        out_specs=pl.BlockSpec((tb, latent_dim), lambda i: (i, 0)),
        compiler_params=pltpu.CompilerParams(dimension_semantics=("parallel",)),
        cost_estimate=cost,
    )(z, action, *weight_args)
    return out if bp == b else out[:b]


def reference_forward(z, action, raw):
    """Pure-JAX f32 reference of the original module math."""
    x = jnp.concatenate([z, action], axis=1)
    h = jnp.where(x @ raw["code0_w"].T + raw["code0_b"] > 0,
                  x @ raw["code0_w"].T + raw["code0_b"],
                  NEG_SLOPE * (x @ raw["code0_w"].T + raw["code0_b"]))
    c = h @ raw["code2_w"].T + raw["code2_b"]
    c = jnp.maximum(c, 0.0)
    cmax = jnp.max(c, axis=1, keepdims=True)
    cmin = jnp.min(c, axis=1, keepdims=True)
    code = jnp.tanh((c - cmin) / (cmax - cmin))
    t = code @ raw["proj0_w"].T + raw["proj0_b"]
    p = jnp.where(t > 0, t, NEG_SLOPE * t)
    y = p @ raw["proj2_w"].T + raw["proj2_b"]
    return jnp.tanh(y)


if __name__ == "__main__":
    # Shapes consistent with VectorSPRDecoder(action_shape=(6,), latent_dim=16, hidden_dim=32)
    batch, latent_dim, action_dim, hidden_dim = 2, 16, 6, 32

    key = jax.random.PRNGKey(0)
    kz, ka, kp = jax.random.split(key, 3)
    z = jax.random.normal(kz, (batch, latent_dim), jnp.float32)
    action = jax.random.normal(ka, (batch, action_dim), jnp.float32)
    raw, params = init_params(kp, latent_dim, action_dim, hidden_dim)

    out = vector_spr_decoder_forward(z, action, params)
    out = jax.block_until_ready(out)

    ref = reference_forward(z, action, raw)
    assert out.shape == (batch, latent_dim)
    # bf16 matmul inputs (f32 accumulate) + approx reciprocal -> ~1e-3 level error vs f32 ref.
    assert jnp.allclose(out, ref, atol=3e-2, rtol=3e-2), "mismatch vs JAX reference"
    print("KERNEL_OK")
</pallas_src>

<mosaic_0001>
module attributes {stable_mosaic.version = 11 : i64} {
  func.func @vector_spr_decoder_kernel(%arg0: i32, %arg1: memref<16x16xf32, #tpu.memory_space<vmem>>, %arg2: memref<16x6xf32, #tpu.memory_space<vmem>>, %arg3: memref<16x128xbf16, #tpu.memory_space<vmem>>, %arg4: memref<6x128xbf16, #tpu.memory_space<vmem>>, %arg5: memref<1x128xf32, #tpu.memory_space<vmem>>, %arg6: memref<128x128xbf16, #tpu.memory_space<vmem>>, %arg7: memref<1x128xf32, #tpu.memory_space<vmem>>, %arg8: memref<128x128xbf16, #tpu.memory_space<vmem>>, %arg9: memref<1x128xf32, #tpu.memory_space<vmem>>, %arg10: memref<128x128xbf16, #tpu.memory_space<vmem>>, %arg11: memref<1x128xf32, #tpu.memory_space<vmem>>, %arg12: memref<16x16xf32, #tpu.memory_space<vmem>>) attributes {dimension_semantics = [#tpu.dimension_semantics<parallel>], iteration_bounds = array<i64: 1>, scalar_prefetch = 0 : i64, scratch_operands = 0 : i64, tpu.core_type = #tpu.core_type<tc>, window_params = [{transform_indices = @transform_0, window_bounds = array<i64: 16, 16>}, {transform_indices = @transform_1, window_bounds = array<i64: 16, 6>}, {pipeline_mode = #tpu.pipeline_mode<synchronous>, transform_indices = @transform_2, window_bounds = array<i64: 16, 128>}, {pipeline_mode = #tpu.pipeline_mode<synchronous>, transform_indices = @transform_3, window_bounds = array<i64: 6, 128>}, {pipeline_mode = #tpu.pipeline_mode<synchronous>, transform_indices = @transform_4, window_bounds = array<i64: 1, 128>}, {pipeline_mode = #tpu.pipeline_mode<synchronous>, transform_indices = @transform_5, window_bounds = array<i64: 128, 128>}, {pipeline_mode = #tpu.pipeline_mode<synchronous>, transform_indices = @transform_6, window_bounds = array<i64: 1, 128>}, {pipeline_mode = #tpu.pipeline_mode<synchronous>, transform_indices = @transform_7, window_bounds = array<i64: 128, 128>}, {pipeline_mode = #tpu.pipeline_mode<synchronous>, transform_indices = @transform_8, window_bounds = array<i64: 1, 128>}, {pipeline_mode = #tpu.pipeline_mode<synchronous>, transform_indices = @transform_9, window_bounds = array<i64: 128, 128>}, {pipeline_mode = #tpu.pipeline_mode<synchronous>, transform_indices = @transform_10, window_bounds = array<i64: 1, 128>}, {transform_indices = @transform_11, window_bounds = array<i64: 16, 16>}]} {
    %c0 = arith.constant 0 : index
    %c0_0 = arith.constant 0 : index
    %0 = vector.load %arg1[%c0, %c0_0] : memref<16x16xf32, #tpu.memory_space<vmem>>, vector<16x16xf32>
    %1 = arith.truncf %0 : vector<16x16xf32> to vector<16x16xbf16>
    %c0_1 = arith.constant 0 : index
    %c0_2 = arith.constant 0 : index
    %2 = vector.load %arg2[%c0_1, %c0_2] : memref<16x6xf32, #tpu.memory_space<vmem>>, vector<16x6xf32>
    %3 = arith.truncf %2 : vector<16x6xf32> to vector<16x6xbf16>
    %c0_3 = arith.constant 0 : index
    %c0_4 = arith.constant 0 : index
    %4 = vector.load %arg3[%c0_3, %c0_4] : memref<16x128xbf16, #tpu.memory_space<vmem>>, vector<16x128xbf16>
    %cst = arith.constant dense<0.000000e+00> : vector<16x128xf32>
    %5 = tpu.matmul %1, %4, %cst {dimension_numbers = #tpu.dot_dimension_numbers<[1], [0], [0], [1], [0, 0, 1, 1], [], []>} : vector<16x16xbf16>, vector<16x128xbf16>, vector<16x128xf32> -> vector<16x128xf32>
    %c0_5 = arith.constant 0 : index
    %c0_6 = arith.constant 0 : index
    %6 = vector.load %arg4[%c0_5, %c0_6] : memref<6x128xbf16, #tpu.memory_space<vmem>>, vector<6x128xbf16>
    %cst_7 = arith.constant dense<0.000000e+00> : vector<16x128xf32>
    %7 = tpu.matmul %3, %6, %cst_7 {dimension_numbers = #tpu.dot_dimension_numbers<[1], [0], [0], [1], [0, 0, 1, 1], [], []>} : vector<16x6xbf16>, vector<6x128xbf16>, vector<16x128xf32> -> vector<16x128xf32>
    %8 = arith.addf %5, %7 : vector<16x128xf32>
    %c0_8 = arith.constant 0 : index
    %c0_9 = arith.constant 0 : index
    %9 = vector.load %arg5[%c0_8, %c0_9] : memref<1x128xf32, #tpu.memory_space<vmem>>, vector<1x128xf32>
    %10 = vector.broadcast %9 : vector<1x128xf32> to vector<16x128xf32>
    %11 = arith.addf %8, %10 : vector<16x128xf32>
    %cst_10 = arith.constant 0.00999999977 : f32
    %12 = vector.broadcast %cst_10 : f32 to vector<16x128xf32>
    %13 = arith.mulf %12, %11 : vector<16x128xf32>
    %14 = arith.maximumf %11, %13 : vector<16x128xf32>
    %15 = arith.truncf %14 : vector<16x128xf32> to vector<16x128xbf16>
    %c0_11 = arith.constant 0 : index
    %c0_12 = arith.constant 0 : index
    %16 = vector.load %arg6[%c0_11, %c0_12] : memref<128x128xbf16, #tpu.memory_space<vmem>>, vector<128x128xbf16>
    %cst_13 = arith.constant dense<0.000000e+00> : vector<16x128xf32>
    %17 = tpu.matmul %15, %16, %cst_13 {dimension_numbers = #tpu.dot_dimension_numbers<[1], [0], [0], [1], [0, 0, 1, 1], [], []>} : vector<16x128xbf16>, vector<128x128xbf16>, vector<16x128xf32> -> vector<16x128xf32>
    %c0_14 = arith.constant 0 : index
    %c0_15 = arith.constant 0 : index
    %18 = vector.load %arg7[%c0_14, %c0_15] : memref<1x128xf32, #tpu.memory_space<vmem>>, vector<1x128xf32>
    %19 = vector.broadcast %18 : vector<1x128xf32> to vector<16x128xf32>
    %20 = arith.addf %17, %19 : vector<16x128xf32>
    %cst_16 = arith.constant 0.000000e+00 : f32
    %21 = vector.broadcast %cst_16 : f32 to vector<16x128xf32>
    %22 = arith.maximumf %20, %21 : vector<16x128xf32>
    %23 = tpu.iota {dimensions = array<i32: 1>} : vector<16x128xi32>
    %cst_17 = arith.constant dense<0xFF800000> : vector<16xf32>
    %24 = vector.multi_reduction <maximumf>, %22, %cst_17 [1] : vector<16x128xf32> to vector<16xf32>
    %25 = vector.shape_cast %24 : vector<16xf32> to vector<16x1xf32>
    %c16_i32 = arith.constant 16 : i32
    %26 = vector.broadcast %c16_i32 : i32 to vector<16x128xi32>
    %27 = arith.cmpi slt, %23, %26 : vector<16x128xi32>
    %cst_18 = arith.constant 0x7F800000 : f32
    %28 = vector.broadcast %cst_18 : f32 to vector<16x128xf32>
    %29 = arith.select %27, %22, %28 : vector<16x128xi1>, vector<16x128xf32>
    %cst_19 = arith.constant dense<0x7F800000> : vector<16xf32>
    %30 = vector.multi_reduction <minimumf>, %29, %cst_19 [1] : vector<16x128xf32> to vector<16xf32>
    %31 = vector.shape_cast %30 : vector<16xf32> to vector<16x1xf32>
    %32 = arith.subf %25, %31 : vector<16x1xf32>
    %cst_20 = arith.constant 9.99999996E-13 : f32
    %33 = vector.broadcast %cst_20 : f32 to vector<16x1xf32>
    %34 = arith.maximumf %32, %33 : vector<16x1xf32>
    %35 = tpu.reciprocal %34 {approx = true} : vector<16x1xf32> -> vector<16x1xf32>
    %36 = vector.broadcast %31 : vector<16x1xf32> to vector<16x128xf32>
    %37 = arith.subf %22, %36 : vector<16x128xf32>
    %38 = vector.broadcast %35 : vector<16x1xf32> to vector<16x128xf32>
    %39 = arith.mulf %37, %38 : vector<16x128xf32>
    %40 = math.tanh %39 : vector<16x128xf32>
    %41 = arith.truncf %40 : vector<16x128xf32> to vector<16x128xbf16>
    %c0_21 = arith.constant 0 : index
    %c0_22 = arith.constant 0 : index
    %42 = vector.load %arg8[%c0_21, %c0_22] : memref<128x128xbf16, #tpu.memory_space<vmem>>, vector<128x128xbf16>
    %cst_23 = arith.constant dense<0.000000e+00> : vector<16x128xf32>
    %43 = tpu.matmul %41, %42, %cst_23 {dimension_numbers = #tpu.dot_dimension_numbers<[1], [0], [0], [1], [0, 0, 1, 1], [], []>} : vector<16x128xbf16>, vector<128x128xbf16>, vector<16x128xf32> -> vector<16x128xf32>
    %c0_24 = arith.constant 0 : index
    %c0_25 = arith.constant 0 : index
    %44 = vector.load %arg9[%c0_24, %c0_25] : memref<1x128xf32, #tpu.memory_space<vmem>>, vector<1x128xf32>
    %45 = vector.broadcast %44 : vector<1x128xf32> to vector<16x128xf32>
    %46 = arith.addf %43, %45 : vector<16x128xf32>
    %cst_26 = arith.constant 0.00999999977 : f32
    %47 = vector.broadcast %cst_26 : f32 to vector<16x128xf32>
    %48 = arith.mulf %47, %46 : vector<16x128xf32>
    %49 = arith.maximumf %46, %48 : vector<16x128xf32>
    %50 = arith.truncf %49 : vector<16x128xf32> to vector<16x128xbf16>
    %c0_27 = arith.constant 0 : index
    %c0_28 = arith.constant 0 : index
    %51 = vector.load %arg10[%c0_27, %c0_28] : memref<128x128xbf16, #tpu.memory_space<vmem>>, vector<128x128xbf16>
    %cst_29 = arith.constant dense<0.000000e+00> : vector<16x128xf32>
    %52 = tpu.matmul %50, %51, %cst_29 {dimension_numbers = #tpu.dot_dimension_numbers<[1], [0], [0], [1], [0, 0, 1, 1], [], []>} : vector<16x128xbf16>, vector<128x128xbf16>, vector<16x128xf32> -> vector<16x128xf32>
    %c0_30 = arith.constant 0 : index
    %c0_31 = arith.constant 0 : index
    %53 = vector.load %arg11[%c0_30, %c0_31] : memref<1x128xf32, #tpu.memory_space<vmem>>, vector<1x128xf32>
    %54 = vector.broadcast %53 : vector<1x128xf32> to vector<16x128xf32>
    %55 = arith.addf %52, %54 : vector<16x128xf32>
    %56 = vector.extract_strided_slice %55 {offsets = [0, 0], sizes = [16, 16], strides = [1, 1]} : vector<16x128xf32> to vector<16x16xf32>
    %57 = math.tanh %56 : vector<16x16xf32>
    %c0_32 = arith.constant 0 : index
    %c0_33 = arith.constant 0 : index
    %58 = vector.load %arg12[%c0_32, %c0_33] : memref<16x16xf32, #tpu.memory_space<vmem>>, vector<16x16xf32>
    tpu.vector_store %arg12[%c0_32, %c0_33], %57 {strides = array<i32>} : memref<16x16xf32, #tpu.memory_space<vmem>>, vector<16x16xf32>,
    return
  }
  func.func @transform_0(%arg0: i32) -> (i32, i32) {
    %c0_i32 = arith.constant 0 : i32
    %c0_i32_0 = arith.constant 0 : i32
    return %arg0, %c0_i32 : i32, i32
  }
  func.func @transform_1(%arg0: i32) -> (i32, i32) {
    %c0_i32 = arith.constant 0 : i32
    %c0_i32_0 = arith.constant 0 : i32
    return %arg0, %c0_i32 : i32, i32
  }
  func.func @transform_2(%arg0: i32) -> (i32, i32) {
    %c0_i32 = arith.constant 0 : i32
    %c0_i32_0 = arith.constant 0 : i32
    %c0_i32_1 = arith.constant 0 : i32
    return %c0_i32, %c0_i32_0 : i32, i32
  }
  func.func @transform_3(%arg0: i32) -> (i32, i32) {
    %c0_i32 = arith.constant 0 : i32
    %c0_i32_0 = arith.constant 0 : i32
    %c0_i32_1 = arith.constant 0 : i32
    return %c0_i32, %c0_i32_0 : i32, i32
  }
  func.func @transform_4(%arg0: i32) -> (i32, i32) {
    %c0_i32 = arith.constant 0 : i32
    %c0_i32_0 = arith.constant 0 : i32
    %c0_i32_1 = arith.constant 0 : i32
    return %c0_i32, %c0_i32_0 : i32, i32
  }
  func.func @transform_5(%arg0: i32) -> (i32, i32) {
    %c0_i32 = arith.constant 0 : i32
    %c0_i32_0 = arith.constant 0 : i32
    %c0_i32_1 = arith.constant 0 : i32
    return %c0_i32, %c0_i32_0 : i32, i32
  }
  func.func @transform_6(%arg0: i32) -> (i32, i32) {
    %c0_i32 = arith.constant 0 : i32
    %c0_i32_0 = arith.constant 0 : i32
    %c0_i32_1 = arith.constant 0 : i32
    return %c0_i32, %c0_i32_0 : i32, i32
  }
  func.func @transform_7(%arg0: i32) -> (i32, i32) {
    %c0_i32 = arith.constant 0 : i32
    %c0_i32_0 = arith.constant 0 : i32
    %c0_i32_1 = arith.constant 0 : i32
    return %c0_i32, %c0_i32_0 : i32, i32
  }
  func.func @transform_8(%arg0: i32) -> (i32, i32) {
    %c0_i32 = arith.constant 0 : i32
    %c0_i32_0 = arith.constant 0 : i32
    %c0_i32_1 = arith.constant 0 : i32
    return %c0_i32, %c0_i32_0 : i32, i32
  }
  func.func @transform_9(%arg0: i32) -> (i32, i32) {
    %c0_i32 = arith.constant 0 : i32
    %c0_i32_0 = arith.constant 0 : i32
    %c0_i32_1 = arith.constant 0 : i32
    return %c0_i32, %c0_i32_0 : i32, i32
  }
  func.func @transform_10(%arg0: i32) -> (i32, i32) {
    %c0_i32 = arith.constant 0 : i32
    %c0_i32_0 = arith.constant 0 : i32
    %c0_i32_1 = arith.constant 0 : i32
    return %c0_i32, %c0_i32_0 : i32, i32
  }
  func.func @transform_11(%arg0: i32) -> (i32, i32) {
    %c0_i32 = arith.constant 0 : i32
    %c0_i32_0 = arith.constant 0 : i32
    return %arg0, %c0_i32 : i32, i32
  }
}

</mosaic_0001>

<bundles_post_ra>
// kernel: tpu_custom_call.1
= control target key start
LH: loop header
LB: loop body
LE: loop exit
PB: predicated region body
PF: predicated region fallthrough
CT: control target
= control target key end

     0   :  { %16 = vsyncpa [#allocation3], 0  ;;  %s1013_s0 = inlined_call_operand.vmem [shape: f32[16,16], index: 0, kind: input, shape index: {}]   ;;  %s1014_s1 = inlined_call_operand.vmem [shape: f32[16,6], index: 1, kind: input, shape index: {}]   ;;  %s1015_s2 = inlined_call_operand.vmem [shape: bf16[16,128], index: 2, kind: input, shape index: {}]   ;;  %s1016_s3 = inlined_call_operand.vmem [shape: bf16[6,128], index: 3, kind: input, shape index: {}]   ;;  %s1017_s4 = inlined_call_operand.vmem [shape: f32[1,128], index: 4, kind: input, shape index: {}]   ;;  %s1018_s5 = inlined_call_operand.hbm [shape: bf16[128,128], index: 5, kind: input, shape index: {}]   ;;  %s1019_s6 = inlined_call_operand.vmem [shape: f32[1,128], index: 6, kind: input, shape index: {}]   ;;  %s1020_s7 = inlined_call_operand.hbm [shape: bf16[128,128], index: 7, kind: input, shape index: {}]   ;;  %s1021_s8 = inlined_call_operand.vmem [shape: f32[1,128], index: 8, kind: input, shape index: {}]   ;;  %s1022_s9 = inlined_call_operand.hbm [shape: bf16[128,128], index: 9, kind: input, shape index: {}]   ;;  %s1023_s10 = inlined_call_operand.vmem [shape: f32[1,128], index: 10, kind: input, shape index: {}]   ;;  %s1024_s11 = inlined_call_operand.hbm [shape: f32[16,16], index: 11, kind: output, shape index: {}]  }
   0x1   :  { %17 = vsyncpa [#allocation6], 0 }
   0x2   :  { %18 = vsyncpa [#allocation4], 0  ;;  %s862_s17 = smov [#allocation5]   ;;  %s863_s19 = smov [#allocation2]  }
   0x3   :  { %s48_s18 = sshll.u32 %s862_s17, 4  ;;  %s34_s20 = sshll.u32 %s863_s19, 4  ;;  %s49_s18 = int_to_ptr.vmem [resolvable:$true] %s48_s18  ;;  %s35_s20 = int_to_ptr.vmem [resolvable:$true] %s34_s20 }
   0x4   :  { %s784_s21 = scalar_lea.vmem %s49_s18, 1024  ;;  %p789_p1 = scmp.lt.s32.totalorder %s49_s18, %s49_s18 }
   0x5   :  { %p785_p0 = scmp.ne.s32.totalorder %s49_s18, %s784_s21  ;;  %p790_p2 = scmp.lt.s32.totalorder %s784_s21, %s784_s21 }
   0x7   :  { %p791_p3 = por %p790_p2, %p789_p1 }
   0x9   :  { %p792_p4 = pnand %p791_p3, %p785_p0 }
   0xb   :  { %795 = shalt.err (!%p792_p4)
}
   0xc   :  { %s864_s22 = smov 64   ;;  %s865_s23 = smov 4  }
   0xd   :  { %54 = dma.hbm_to_vmem [thread:$0]  %s1020_s7, 1024, %s49_s18, [#allocation6], %s864_s22, %s864_s22, %s865_s23  }
   0xe   :  { %s804_s26 = scalar_lea.vmem %s35_s20, 1024  ;;  %p809_p6 = scmp.lt.s32.totalorder %s35_s20, %s35_s20 }
   0xf   :  { %p805_p5 = scmp.ne.s32.totalorder %s35_s20, %s804_s26  ;;  %p810_p7 = scmp.lt.s32.totalorder %s804_s26, %s804_s26 }
  0x11   :  { %p811_p8 = por %p810_p7, %p809_p6 }
  0x13   :  { %p812_p9 = pnand %p811_p8, %p805_p5 }
  0x15   :  { %815 = shalt.err (!%p812_p9)
}
  0x16   :  { %40 = dma.hbm_to_vmem [thread:$0]  %s1018_s5, 1024, %s35_s20, [#allocation3], %s864_s22, %s864_s22, %s865_s23  }
  0x17   :  { %s866_s29 = smov [#allocation7]  }
  0x18   :  { %s62_s30 = sshll.u32 %s866_s29, 4  ;;  %s63_s30 = int_to_ptr.vmem [resolvable:$true] %s62_s30 }
  0x19   :  { %s824_s12 = scalar_lea.vmem %s63_s30, 1024  ;;  %p829_p11 = scmp.lt.s32.totalorder %s63_s30, %s63_s30 }
  0x1a   :  { %p825_p10 = scmp.ne.s32.totalorder %s63_s30, %s824_s12  ;;  %p830_p12 = scmp.lt.s32.totalorder %s824_s12, %s824_s12 }
  0x1c   :  { %p831_p13 = por %p830_p12, %p829_p11 }
  0x1e   :  { %p832_p0 = pnand %p831_p13, %p825_p10 }
  0x20   :  { %835 = shalt.err (!%p832_p0)
}
  0x21   :  { %68 = dma.hbm_to_vmem [thread:$0]  %s1022_s9, 1024, %s63_s30, [#allocation6], %s864_s22, %s864_s22, %s865_s23  }
  0x22   :  { %856 = dma.done.wait [#allocation3], 1024  }
  0x23   :  { %857 = vsyncadd [#allocation3], 4294966272 }
  0x24   :  { %858 = dma.done.wait [#allocation6], 2048  }
  0x25   :  { %859 = vsyncadd [#allocation6], 4294965248  ;;  %v867_v0 = vmov 0.0   ;;  %vm868_vm0 = vmmov 0   ;;  %vm94_vm1 = vcmask 1042432   ;;  %v84_v2 = vld [vmem:[%s1014_s1] sm:$0xff]  ;;  %v318_v36 = vlaneseq }
  0x26   :  { %657 = vmatprep.subr.bf16.mxu1 %v867_v0  ;;  %659 = vmatprep.mubr.msk.bf16.mxu1 %vm868_vm0, %v867_v0  ;;  %v89_v1 = vld [vmem:[%s1016_s3] sm:$0x7]  ;;  %v85_v3 = vld [vmem:[%s1014_s1 + $0x8] sm:$0xff]  ;;  %vm90_vm2 = vcmask 48128   ;;  %v740_v7 = vld [vmem:[#allocation2 + $0x38] sm:$0xff]   ;;  %vm145_vm3 = vcmask 130048  }
  0x27   :  { %669 = vmatprep.subr.bf16.mxu0 %v867_v0  ;;  %685 = vmatprep.mubr.msk.bf16.mxu0 %vm868_vm0, %v867_v0  ;;  %v96_v4 = vsel %vm94_vm1, %v89_v1, 0  ;;  %v86_v5 = vpack.c.bf16 %v85_v3, %v84_v2  ;;  %v739_v6 = vld [vmem:[%s1015_s2] sm:$0xff]   ;;  %v82_v9 = vld [vmem:[%s1013_s0 + $0x8] sm:$0xff]  ;;  %v741_v10 = vld [vmem:[#allocation2 + $0x30] sm:$0xff]   ;;  %v319_v38 = vand.u32 127, %v318_v36 }
  0x28   :  { %658 = vmatpush3.bf16.msra.mxu1 %v96_v4  ;;  %v81_v8 = vld [vmem:[%s1013_s0] sm:$0xff]  ;;  %670 = vmatpush3.bf16.msra.mxu0 %v740_v7  ;;  %v742_v12 = vld [vmem:[#allocation2 + $0x28] sm:$0xff]   ;;  %v744_v14 = vld [vmem:[#allocation2 + $0x18] sm:$0xff]  }
  0x29   :  { %663 = vmatprep.subr.bf16.mxu1 %v867_v0  ;;  %671 = vmatprep.subr.bf16.mxu0 %v867_v0  ;;  %v83_v11 = vpack.c.bf16 %v82_v9, %v81_v8  ;;  %v743_v13 = vld [vmem:[#allocation2 + $0x20] sm:$0xff]   ;;  %v745_v15 = vld [vmem:[#allocation2 + $0x10] sm:$0xff]   ;;  %v746_v16 = vld [vmem:[#allocation2 + $0x8] sm:$0xff]   ;;  %vm324_vm4 = vcmp.lt.s32.totalorder %v319_v38, 16 }
  0x2a   :  { %v747_v17 = vld [vmem:[#allocation2] sm:$0xff]   ;;  %v748_v49 = vld [vmem:[#allocation5 + $0x38] sm:$0xff]   ;;  %v749_v50 = vld [vmem:[#allocation5 + $0x30] sm:$0xff]  }
  0x2b   :  { %660 = vmatmul.mubr.msk.bf16.vlgmr.msra.gmra.mxu1 %vm90_vm2, %v86_v5  ;;  %v598_v23 = vld [vmem:[%s1017_s4] ss:$0 sm:$0xff]  ;;  %v750_v51 = vld [vmem:[#allocation5 + $0x28] sm:$0xff]   ;;  %v752_v53 = vld [vmem:[#allocation5 + $0x18] sm:$0xff]  }
  0x2c   :  { %664 = vmatpush3.bf16.msra.mxu1 %v739_v6  ;;  %665 = vmatprep.mubr.msk.bf16.mxu1 %vm868_vm0, %v867_v0  ;;  %v599_v37 = vld [vmem:[%s1019_s6] ss:$0 sm:$0xff]  ;;  %v753_v54 = vld [vmem:[#allocation5 + $0x10] sm:$0xff]   ;;  %v754_v55 = vld [vmem:[#allocation5 + $0x8] sm:$0xff]  }
  0x2d   :  { %689 = vmatprep.subr.bf16.mxu1 %v867_v0  ;;  %672 = vmatpush3.bf16.msra.mxu0 %v741_v10  ;;  %v751_v52 = vld [vmem:[#allocation5 + $0x20] sm:$0xff]   ;;  %v756_v57 = vld [vmem:[#allocation7 + $0x38] sm:$0xff]   ;;  %v757_v58 = vld [vmem:[#allocation7 + $0x30] sm:$0xff]  }
  0x2e   :  { %673 = vmatprep.subr.bf16.mxu0 %v867_v0  ;;  %v755_v56 = vld [vmem:[#allocation5] sm:$0xff]   ;;  %v758_v59 = vld [vmem:[#allocation7 + $0x28] sm:$0xff]   ;;  %v760_v61 = vld [vmem:[#allocation7 + $0x18] sm:$0xff]  }
  0x2f   :  { %v759_v60 = vld [vmem:[#allocation7 + $0x20] sm:$0xff]  }
  0x31   :  { %674 = vmatpush3.bf16.msra.mxu0 %v742_v12 }
  0x32   :  { %675 = vmatprep.subr.bf16.mxu0 %v867_v0 }
  0x33   :  { %666 = vmatmul.mubr.msk.bf16.vlgmr.msra.gmra.mxu1 %vm145_vm3, %v83_v11 }
  0x34   :  { %705 = vmatprep.mubr.msk.bf16.mxu1 %vm868_vm0, %v867_v0  ;;  %690 = vmatpush3.bf16.msra.mxu1 %v748_v49 }
  0x35   :  { %676 = vmatpush3.bf16.msra.mxu0 %v743_v13  ;;  %691 = vmatprep.subr.bf16.mxu1 %v867_v0 }
  0x36   :  { %677 = vmatprep.subr.bf16.mxu0 %v867_v0 }
  0x38   :  { %692 = vmatpush3.bf16.msra.mxu1 %v749_v50 }
  0x39   :  { %678 = vmatpush3.bf16.msra.mxu0 %v744_v14  ;;  %693 = vmatprep.subr.bf16.mxu1 %v867_v0 }
  0x3a   :  { %679 = vmatprep.subr.bf16.mxu0 %v867_v0 }
  0x3c   :  { %694 = vmatpush3.bf16.msra.mxu1 %v750_v51 }
  0x3d   :  { %680 = vmatpush3.bf16.msra.mxu0 %v745_v15  ;;  %695 = vmatprep.subr.bf16.mxu1 %v867_v0 }
  0x3e   :  { %681 = vmatprep.subr.bf16.mxu0 %v867_v0 }
  0x40   :  { %696 = vmatpush3.bf16.msra.mxu1 %v751_v52 }
  0x41   :  { %682 = vmatpush3.bf16.msra.mxu0 %v746_v16  ;;  %697 = vmatprep.subr.bf16.mxu1 %v867_v0  ;;  %v761_v16 = vld [vmem:[#allocation7 + $0x10] sm:$0xff]  }
  0x42   :  { %683 = vmatprep.subr.bf16.mxu0 %v867_v0 }
  0x44   :  { %698 = vmatpush3.bf16.msra.mxu1 %v752_v53 }
  0x45   :  { %684 = vmatpush3.bf16.msra.mxu0 %v747_v17  ;;  %699 = vmatprep.subr.bf16.mxu1 %v867_v0  ;;  %v762_v17 = vld [vmem:[#allocation7 + $0x8] sm:$0xff]  }
  0x46   :  { %709 = vmatprep.subr.bf16.mxu0 %v867_v0 }
  0x48   :  { %700 = vmatpush3.bf16.msra.mxu1 %v753_v54 }
  0x49   :  { %701 = vmatprep.subr.bf16.mxu1 %v867_v0 }
  0x4c   :  { %702 = vmatpush3.bf16.msra.mxu1 %v754_v55 }
  0x4d   :  { %703 = vmatprep.subr.bf16.mxu1 %v867_v0 }
  0x50   :  { %704 = vmatpush3.bf16.msra.mxu1 %v755_v56 }
  0xeb   :  { %v132_v18 = vpop.f32.mrf.mxu1 }
  0xed   :  { %v661_v19 = vpop.f32.mrf.mxu1 }
  0xee   :  { %v608_v19 = vld [vmem:[%s1021_s8] ss:$0 sm:$0xff]  ;;  %s869_s8 = smov [#allocation8]  }
  0xef   :  { %v135_v20 = vpop.f32.mrf.mxu1  ;;  %s582_s26 = sshll.u32 %s869_s8, 4  ;;  %s583_s26 = int_to_ptr.vmem [resolvable:$true] %s582_s26 }
  0xf0   :  { %s836_s27 = scalar_lea.vmem %s583_s26, 256  ;;  %p841_p2 = scmp.lt.s32.totalorder %s583_s26, %s583_s26 }
  0xf1   :  { %v662_v21 = vpop.f32.mrf.mxu1  ;;  %p837_p1 = scmp.ne.s32.totalorder %s583_s26, %s836_s27  ;;  %p842_p3 = scmp.lt.s32.totalorder %s836_s27, %s836_s27 }
  0xf3   :  { %v183_v22 = vpop.f32.mrf.mxu1  ;;  %p843_p4 = por %p842_p3, %p841_p2 }
  0xf4   :  { %v184_v24 = vadd.f32 %v183_v22, %v132_v18  ;;  %v763_v18 = vld [vmem:[#allocation7] sm:$0xff]  }
  0xf5   :  { %v667_v25 = vpop.f32.mrf.mxu1  ;;  %p844_p5 = pnand %p843_p4, %p837_p1 }
  0xf6   :  { %v197_v26 = vadd.f32 %v598_v23, %v184_v24 }
  0xf7   :  { %v186_v27 = vpop.f32.mrf.mxu1 }
  0xf8   :  { %v187_v28 = vadd.f32 %v186_v27, %v135_v20  ;;  %v199_v30 = vmul.f32 0.01, %v197_v26 }
  0xf9   :  { %v668_v29 = vpop.f32.mrf.mxu1 }
  0xfa   :  { %v198_v31 = vadd.f32 %v598_v23, %v187_v28  ;;  %v201_v33 = vmax.f32 %v197_v26, %v199_v30 }
  0xfc   :  { %v200_v32 = vmul.f32 0.01, %v198_v31 }
  0xfe   :  { %v202_v34 = vmax.f32 %v198_v31, %v200_v32 }
 0x100   :  { %v203_v35 = vpack.c.bf16 %v202_v34, %v201_v33 }
 0x102   :  { %686 = vmatmul.mubr.bf16.vlgmr.msra.gmra.mxu0 %v203_v35 }
 0x103   :  { %725 = vmatprep.mubr.msk.bf16.mxu0 %vm868_vm0, %v867_v0  ;;  %710 = vmatpush3.bf16.msra.mxu0 %v756_v57 }
 0x104   :  { %711 = vmatprep.subr.bf16.mxu0 %v867_v0 }
 0x107   :  { %712 = vmatpush3.bf16.msra.mxu0 %v757_v58 }
 0x108   :  { %713 = vmatprep.subr.bf16.mxu0 %v867_v0 }
 0x10b   :  { %714 = vmatpush3.bf16.msra.mxu0 %v758_v59 }
 0x10c   :  { %715 = vmatprep.subr.bf16.mxu0 %v867_v0 }
 0x10f   :  { %716 = vmatpush3.bf16.msra.mxu0 %v759_v60 }
 0x110   :  { %717 = vmatprep.subr.bf16.mxu0 %v867_v0 }
 0x113   :  { %718 = vmatpush3.bf16.msra.mxu0 %v760_v61 }
 0x114   :  { %719 = vmatprep.subr.bf16.mxu0 %v867_v0 }
 0x117   :  { %720 = vmatpush3.bf16.msra.mxu0 %v761_v16 }
 0x118   :  { %721 = vmatprep.subr.bf16.mxu0 %v867_v0 }
 0x11b   :  { %722 = vmatpush3.bf16.msra.mxu0 %v762_v17 }
 0x11c   :  { %723 = vmatprep.subr.bf16.mxu0 %v867_v0  ;;  %v617_v0 = vld [vmem:[%s1023_s10] ss:$0 sm:$0xff] }
 0x11f   :  { %724 = vmatpush3.bf16.msra.mxu0 %v763_v18 }
 0x1c2   :  { %v309_v39 = vpop.f32.mrf.mxu0 }
 0x1c3   :  { %v310_v40 = vadd.f32 %v599_v37, %v309_v39 }
 0x1c4   :  { %v687_v41 = vpop.f32.mrf.mxu0 }
 0x1c5   :  { %v316_v42 = vmax.f32 %v310_v40, 0.0 }
 0x1c6   :  { %v312_v43 = vpop.f32.mrf.mxu0 }
 0x1c7   :  { %v313_v44 = vadd.f32 %v599_v37, %v312_v43  ;;  %320 = vmax.xlane.f32.xlu0 %v316_v42  ;;  %v325_v45 = vsel %vm324_vm4, %v316_v42, inf }
 0x1c8   :  { %327 = vmin.xlane.f32.xlu1 %v325_v45  ;;  %v688_v46 = vpop.f32.mrf.mxu0 }
 0x1c9   :  { %v317_v47 = vmax.f32 %v313_v44, 0.0 }
 0x1cb   :  { %322 = vmax.xlane.f32.xlu0 %v317_v47  ;;  %v326_v48 = vsel %vm324_vm4, %v317_v47, inf }
 0x1cc   :  { %329 = vmin.xlane.f32.xlu1 %v326_v48 }
 0x250   :  { %v321_v62 = vpop.xlane.xlu0 %320 }
 0x251   :  { %v328_v63 = vpop.xlane.xlu1 %327 }
 0x252   :  { %v331_v1 = vsub.f32 %v321_v62, %v328_v63  ;;  %v337_v8 = vsub.f32 %v316_v42, %v328_v63 }
 0x254   :  { %v333_v2 = vmax.f32 %v331_v1, 1e-12  ;;  %v323_v3 = vpop.xlane.xlu0 %322 }
 0x255   :  { %v330_v4 = vpop.xlane.xlu1 %329 }
 0x256   :  { %764 = vrcp.f32 %v333_v2  ;;  %v332_v5 = vsub.f32 %v323_v3, %v330_v4  ;;  %v338_v10 = vsub.f32 %v317_v47, %v330_v4 }
 0x258   :  { %v334_v6 = vmax.f32 %v332_v5, 1e-12 }
 0x25a   :  { %766 = vrcp.f32 %v334_v6 }
 0x263   :  { %v765_v7 = vpop.eup %764 }
 0x264   :  { %v339_v9 = vmul.f32 %v765_v7, %v337_v8 }
 0x266   :  { %768 = vtanh.f32 %v339_v9 }
 0x267   :  { %v767_v11 = vpop.eup %766 }
 0x268   :  { %v340_v12 = vmul.f32 %v767_v11, %v338_v10 }
 0x26a   :  { %770 = vtanh.f32 %v340_v12 }
 0x273   :  { %v769_v13 = vpop.eup %768 }
 0x277   :  { %v771_v14 = vpop.eup %770 }
 0x278   :  { %v343_v15 = vpack.c.bf16 %v771_v14, %v769_v13 }
 0x27a   :  { %706 = vmatmul.mubr.bf16.vlgmr.msra.gmra.mxu1 %v343_v15 }
 0x33a   :  { %v449_v20 = vpop.f32.mrf.mxu1 }
 0x33b   :  { %v450_v21 = vadd.f32 %v608_v19, %v449_v20 }
 0x33c   :  { %v707_v22 = vpop.f32.mrf.mxu1 }
 0x33d   :  { %v456_v24 = vmul.f32 0.01, %v450_v21 }
 0x33e   :  { %v452_v23 = vpop.f32.mrf.mxu1 }
 0x33f   :  { %v453_v25 = vadd.f32 %v608_v19, %v452_v23  ;;  %v458_v28 = vmax.f32 %v450_v21, %v456_v24 }
 0x340   :  { %v708_v26 = vpop.f32.mrf.mxu1 }
 0x341   :  { %v457_v27 = vmul.f32 0.01, %v453_v25 }
 0x343   :  { %v459_v29 = vmax.f32 %v453_v25, %v457_v27 }
 0x345   :  { %v460_v30 = vpack.c.bf16 %v459_v29, %v458_v28 }
 0x347   :  { %726 = vmatmul.mubr.bf16.vlgmr.msra.gmra.mxu0 %v460_v30 }
 0x407   :  { %v566_v31 = vpop.f32.mrf.mxu0 }
 0x408   :  { %v567_v32 = vadd.f32 %v617_v0, %v566_v31 }
 0x409   :  { %v727_v33 = vpop.f32.mrf.mxu0 }
 0x40a   :  { %772 = vtanh.f32 %v567_v32 }
 0x40b   :  { %v569_v34 = vpop.f32.mrf.mxu0 }
 0x40c   :  { %v570_v35 = vadd.f32 %v617_v0, %v569_v34 }
 0x40d   :  { %v728_v36 = vpop.f32.mrf.mxu0 }
 0x40e   :  { %774 = vtanh.f32 %v570_v35 }
 0x417   :  { %v773_v37 = vpop.eup %772 }
 0x418   :  { %575 = vst.msk [vmem:[#allocation8] sm:$0xff] %vm145_vm3, %v773_v37 }
 0x41b   :  { %v775_v38 = vpop.eup %774 }
 0x41c   :  { %576 = vst.msk [vmem:[#allocation8 + $0x8] sm:$0xff] %vm145_vm3, %v775_v38 }
 0x41d   :  { %847 = shalt.err (!%p844_p5)
}
 0x41e   :  { %s870_s10 = smov 128   ;;  %s871_s28 = smov 8  }
 0x41f   :  { %588 = dma.vmem_to_hbm [thread:$0]  %s583_s26, 256, %s1024_s11, [#allocation4], %s870_s10, %s870_s10, %s871_s28  }
 0x420   :  { %860 = dma.done.wait [#allocation4], 256  }
 0x421   :  { %861 = vsyncadd [#allocation4], 4294967040 }
 0x422   :  { %592 = vsyncpa [#allocation3], 1 }
 0x423   :  { %593 = vsyncpa [#allocation6], 1 }
 0x424   :  { %594 = vsyncpa [#allocation4], 1 }

</bundles_post_ra>
